<compile_context>
chip_gen: v5e
topology: v5e:2x2
jax: 0.10.0
libtpu: 0.0.40
codegen_flags: <defaults>
</compile_context>

<pallas_src>
import jax
import jax.numpy as jnp
from jax import lax
from jax.experimental import pallas as pl
from jax.experimental.pallas import tpu as pltpu

FEAT = 256
NUM_CLASSES = 6
LANE = 128


def _round_up(a, b):
    return ((a + b - 1) // b) * b


# ----------------------------------------------------------------------------
# Fused kernel: conv-stem matmul + ReLU + attention softmax pooling + fc + sigmoid
# ----------------------------------------------------------------------------
def fused_backbone_agg_head(patches, w_conv, b_conv, w_attn, w_fc, b_fc,
                            *, n_tokens, tn):
    """patches: (B, N_pad, Kp) bf16; returns (B, 1, 128) f32 (sigmoid probs, lane-padded)."""
    B, N_pad, Kp = patches.shape
    D = w_conv.shape[1]
    T = N_pad // tn

    def kernel(p_ref, wc_ref, bc_ref, wa_ref, wf_ref, bf_ref, o_ref,
               acc_ref, m_ref, l_ref):
        t = pl.program_id(1)

        @pl.when(t == 0)
        def _init():
            acc_ref[...] = jnp.zeros_like(acc_ref)
            m_ref[...] = jnp.full_like(m_ref, -1e30)
            l_ref[...] = jnp.zeros_like(l_ref)

        # --- backbone: im2col matmul (bf16 MXU operands, f32 acc) + bias + ReLU
        feats = jnp.dot(p_ref[0], wc_ref[...],
                        preferred_element_type=jnp.float32)        # (tn, D) f32
        feats = jnp.maximum(feats + bc_ref[...], 0.0)

        # --- attention scores: Linear(D, 1) as VPU multiply + XLU lane reduce
        # (keeps the MXU slot free; f32 elementwise path is v5e-friendly).
        s = jnp.sum(feats * wa_ref[...], axis=-1, keepdims=True)   # (tn, 1) f32
        # NOTE: the attention bias is a constant shift before softmax and
        # cancels exactly (softmax shift invariance), so it is omitted here.

        if n_tokens != N_pad:  # static: mask only if the token axis was padded.
            # Invariant: N_pad = round_up(N, tn) => padding < tn, so every tile
            # contains at least one real token (required by the -1e30 mask).
            tok = t * tn + lax.broadcasted_iota(jnp.int32, (tn, 1), 0)
            s = jnp.where(tok < n_tokens, s, -1e30)

        # --- online softmax accumulation over token tiles ---------------------
        m_prev = m_ref[...]                                         # (1, 1)
        m_cur = jnp.maximum(m_prev, jnp.max(s, keepdims=True))      # (1, 1)
        alpha = jnp.exp(m_prev - m_cur)                             # (1, 1)
        p = jnp.exp(s - m_cur)                                      # (tn, 1) f32
        l_ref[...] = alpha * l_ref[...] + jnp.sum(p, keepdims=True)
        # p^T @ feats on the MXU with bf16 operands, f32 accumulation.
        contrib = lax.dot_general(p.astype(jnp.bfloat16),
                                  feats.astype(jnp.bfloat16),
                                  (((0,), (0,)), ((), ())),
                                  preferred_element_type=jnp.float32)  # (1, D)
        acc_ref[...] = alpha * acc_ref[...] + contrib
        m_ref[...] = m_cur

        # --- finalize: normalize, fc head, sigmoid (lane-dense output) --------
        @pl.when(t == pl.num_programs(1) - 1)
        def _finalize():
            agg = acc_ref[...] / l_ref[...]                         # (1, D) f32
            logits = jnp.dot(agg.astype(jnp.bfloat16), wf_ref[...],
                             preferred_element_type=jnp.float32) + bf_ref[...]
            o_ref[0] = jax.nn.sigmoid(logits)                       # (1, 128)

    cost = pl.CostEstimate(
        flops=2 * B * N_pad * Kp * D + 4 * B * N_pad * D + 2 * B * D * LANE,
        transcendentals=B * N_pad,
        bytes_accessed=(B * N_pad * Kp * 2            # patches (bf16)
                        + Kp * D * 2 + D * 4 + D * 4  # w_conv, b_conv, w_attn
                        + D * LANE * 2 + LANE * 4     # w_fc, b_fc
                        + B * LANE * 4),              # output
    )

    const = pl.Buffered(1)  # constant-index operands: no double-buffering
    return pl.pallas_call(
        kernel,
        out_shape=jax.ShapeDtypeStruct((B, 1, LANE), jnp.float32),
        grid=(B, T),
        in_specs=[
            pl.BlockSpec((1, tn, Kp), lambda b, t: (b, t, 0)),            # patches bf16
            pl.BlockSpec((Kp, D), lambda b, t: (0, 0), pipeline_mode=const),   # w_conv bf16
            pl.BlockSpec((1, D), lambda b, t: (0, 0), pipeline_mode=const),    # b_conv f32
            pl.BlockSpec((1, D), lambda b, t: (0, 0), pipeline_mode=const),    # w_attn f32
            pl.BlockSpec((D, LANE), lambda b, t: (0, 0), pipeline_mode=const), # w_fc bf16
            pl.BlockSpec((1, LANE), lambda b, t: (0, 0), pipeline_mode=const), # b_fc f32
        ],
        out_specs=pl.BlockSpec((1, 1, LANE), lambda b, t: (b, 0, 0)),
        scratch_shapes=[
            pltpu.VMEM((1, D), jnp.float32),   # acc = sum exp(s - m) * feats
            pltpu.VMEM((1, 1), jnp.float32),   # running max m
            pltpu.VMEM((1, 1), jnp.float32),   # running sum-exp l
        ],
        compiler_params=pltpu.CompilerParams(
            dimension_semantics=("parallel", "arbitrary")),
        cost_estimate=cost,
    )(patches, w_conv, b_conv, w_attn, w_fc, b_fc)


# ----------------------------------------------------------------------------
# Glue: im2col (3x3, stride 2, pad 1), parameter init, wrapper
# ----------------------------------------------------------------------------
def im2col_3x3_s2(x_nhwc):
    B, H, W, C = x_nhwc.shape
    Ho, Wo = (H + 1) // 2, (W + 1) // 2      # matches Conv2d(k=3, s=2, p=1)
    xp = jnp.pad(x_nhwc, ((0, 0), (1, 1), (1, 1), (0, 0)))
    cols = []
    for dh in range(3):
        for dw in range(3):
            cols.append(xp[:, dh:dh + 2 * Ho:2, dw:dw + 2 * Wo:2, :])
    patches = jnp.concatenate(cols, axis=-1)                       # (B, Ho, Wo, 9C)
    return patches.reshape(B, Ho * Wo, 9 * C)


def init_params(key, c_in, feat=FEAT, num_classes=NUM_CLASSES):
    k1, k2, k3, k4, k5, k6 = jax.random.split(key, 6)
    return {
        "w_conv": jax.random.normal(k1, (9 * c_in, feat), jnp.float32) * 0.05,
        "b_conv": jax.random.normal(k2, (1, feat), jnp.float32) * 0.05,
        "w_attn": jax.random.normal(k3, (feat,), jnp.float32) * 0.05,
        "b_attn": jax.random.normal(k4, (1,), jnp.float32) * 0.05,
        "w_fc":   jax.random.normal(k5, (feat, num_classes), jnp.float32) * 0.05,
        "b_fc":   jax.random.normal(k6, (1, num_classes), jnp.float32) * 0.05,
    }


def detect_model(x_nchw, params):
    # accept NCHW (PyTorch convention), compute in NHWC / token-major.
    x = jnp.transpose(x_nchw, (0, 2, 3, 1)).astype(jnp.float32)
    patches = im2col_3x3_s2(x)                         # (B, N, 9*C) f32
    N, K = patches.shape[1], patches.shape[2]

    Kp = _round_up(K, 32)                              # aligned contraction dim
    tn = min(2048, _round_up(N, 128))                  # big, lane/sublane-aligned tile
    N_pad = _round_up(N, tn)                           # cdiv-correct token padding

    patches = jnp.pad(patches, ((0, 0), (0, N_pad - N), (0, Kp - K)))
    patches = patches.astype(jnp.bfloat16)             # bf16 MXU operand (halves HBM)
    w_conv = jnp.pad(params["w_conv"], ((0, Kp - K), (0, 0))).astype(jnp.bfloat16)
    b_conv = params["b_conv"]                          # (1, 256) f32

    w_attn = params["w_attn"].reshape(1, FEAT)         # f32 row (used on VPU/XLU)
    w_fc = jnp.pad(params["w_fc"],
                   ((0, 0), (0, LANE - NUM_CLASSES))).astype(jnp.bfloat16)
    b_fc = jnp.pad(params["b_fc"], ((0, 0), (0, LANE - NUM_CLASSES)))

    out = fused_backbone_agg_head(patches, w_conv, b_conv, w_attn, w_fc, b_fc,
                                  n_tokens=N, tn=tn)   # (B, 1, 128)
    return out[:, 0, :NUM_CLASSES]                     # (B, num_classes)


def detect_model_ref(x_nchw, params):
    """Pure-JAX f32 reference of the same forward (for correctness check)."""
    x = jnp.transpose(x_nchw, (0, 2, 3, 1)).astype(jnp.float32)
    patches = im2col_3x3_s2(x)                                     # (B, N, 9C)
    feats = jnp.maximum(
        jnp.einsum("bnk,kd->bnd", patches, params["w_conv"]) + params["b_conv"], 0.0)
    scores = jnp.einsum("bnd,d->bn", feats, params["w_attn"]) + params["b_attn"][0]
    attn = jax.nn.softmax(scores, axis=1)[..., None]
    agg = jnp.sum(attn * feats, axis=1)                            # (B, 256)
    logits = agg @ params["w_fc"] + params["b_fc"]
    return jax.nn.sigmoid(logits)


if __name__ == "__main__":
    key = jax.random.PRNGKey(0)
    kx, kp = jax.random.split(key)
    x = jax.random.normal(kx, (2, 3, 16, 16), jnp.float32)   # NCHW input, like PyTorch
    params = init_params(kp, c_in=3)

    out = jax.block_until_ready(jax.jit(detect_model)(x, params))
    ref = detect_model_ref(x, params)

    assert out.shape == (2, NUM_CLASSES), out.shape
    assert bool(jnp.all((out >= 0.0) & (out <= 1.0)))
    assert bool(jnp.allclose(out, ref, atol=3e-2, rtol=0.0)), float(jnp.max(jnp.abs(out - ref)))
    print("KERNEL_OK")
</pallas_src>

<mosaic_0001>
module attributes {stable_mosaic.version = 11 : i64} {
  func.func @kernel(%arg0: i32, %arg1: i32, %arg2: memref<1x128x32xbf16, #tpu.memory_space<vmem>>, %arg3: memref<32x256xbf16, #tpu.memory_space<vmem>>, %arg4: memref<1x256xf32, #tpu.memory_space<vmem>>, %arg5: memref<1x256xf32, #tpu.memory_space<vmem>>, %arg6: memref<256x128xbf16, #tpu.memory_space<vmem>>, %arg7: memref<1x128xf32, #tpu.memory_space<vmem>>, %arg8: memref<1x1x128xf32, #tpu.memory_space<vmem>>, %arg9: memref<1x256xf32, #tpu.memory_space<vmem>>, %arg10: memref<1x1xf32, #tpu.memory_space<vmem>>, %arg11: memref<1x1xf32, #tpu.memory_space<vmem>>) attributes {dimension_semantics = [#tpu.dimension_semantics<parallel>, #tpu.dimension_semantics<arbitrary>], iteration_bounds = array<i64: 2, 1>, scalar_prefetch = 0 : i64, scratch_operands = 3 : i64, tpu.core_type = #tpu.core_type<tc>, window_params = [{transform_indices = @transform_0, window_bounds = array<i64: 1, 128, 32>}, {pipeline_mode = #tpu.pipeline_mode<synchronous>, transform_indices = @transform_1, window_bounds = array<i64: 32, 256>}, {pipeline_mode = #tpu.pipeline_mode<synchronous>, transform_indices = @transform_2, window_bounds = array<i64: 1, 256>}, {pipeline_mode = #tpu.pipeline_mode<synchronous>, transform_indices = @transform_3, window_bounds = array<i64: 1, 256>}, {pipeline_mode = #tpu.pipeline_mode<synchronous>, transform_indices = @transform_4, window_bounds = array<i64: 256, 128>}, {pipeline_mode = #tpu.pipeline_mode<synchronous>, transform_indices = @transform_5, window_bounds = array<i64: 1, 128>}, {transform_indices = @transform_6, window_bounds = array<i64: 1, 1, 128>}]} {
    %c0_i32 = arith.constant 0 : i32
    %0 = arith.cmpi eq, %arg1, %c0_i32 : i32
    %1 = arith.extui %0 : i1 to i32
    %c0_i32_0 = arith.constant 0 : i32
    %2 = arith.cmpi ne, %1, %c0_i32_0 : i32
    scf.if %2 {
      %cst_29 = arith.constant 0.000000e+00 : f32
      %58 = vector.broadcast %cst_29 : f32 to vector<1x256xf32>
      %c0_30 = arith.constant 0 : index
      %c0_31 = arith.constant 0 : index
      %59 = vector.load %arg9[%c0_30, %c0_31] : memref<1x256xf32, #tpu.memory_space<vmem>>, vector<1x256xf32>
      tpu.vector_store %arg9[%c0_30, %c0_31], %58 {strides = array<i32>} : memref<1x256xf32, #tpu.memory_space<vmem>>, vector<1x256xf32>,
      %cst_32 = arith.constant -1.000000e+30 : f32
      %60 = vector.broadcast %cst_32 : f32 to vector<1x1xf32>
      %c0_33 = arith.constant 0 : index
      %c0_34 = arith.constant 0 : index
      %61 = vector.load %arg10[%c0_33, %c0_34] : memref<1x1xf32, #tpu.memory_space<vmem>>, vector<1x1xf32>
      tpu.vector_store %arg10[%c0_33, %c0_34], %60 {strides = array<i32>} : memref<1x1xf32, #tpu.memory_space<vmem>>, vector<1x1xf32>,
      %cst_35 = arith.constant 0.000000e+00 : f32
      %62 = vector.broadcast %cst_35 : f32 to vector<1x1xf32>
      %c0_36 = arith.constant 0 : index
      %c0_37 = arith.constant 0 : index
      %63 = vector.load %arg11[%c0_36, %c0_37] : memref<1x1xf32, #tpu.memory_space<vmem>>, vector<1x1xf32>
      tpu.vector_store %arg11[%c0_36, %c0_37], %62 {strides = array<i32>} : memref<1x1xf32, #tpu.memory_space<vmem>>, vector<1x1xf32>,
    } else {
    }
    %c0 = arith.constant 0 : index
    %c0_1 = arith.constant 0 : index
    %c0_2 = arith.constant 0 : index
    %3 = vector.load %arg2[%c0, %c0_1, %c0_2] : memref<1x128x32xbf16, #tpu.memory_space<vmem>>, vector<1x128x32xbf16>
    %4 = vector.shape_cast %3 : vector<1x128x32xbf16> to vector<128x32xbf16>
    %c0_3 = arith.constant 0 : index
    %c0_4 = arith.constant 0 : index
    %5 = vector.load %arg3[%c0_3, %c0_4] : memref<32x256xbf16, #tpu.memory_space<vmem>>, vector<32x256xbf16>
    %cst = arith.constant dense<0.000000e+00> : vector<128x256xf32>
    %6 = tpu.matmul %4, %5, %cst {dimension_numbers = #tpu.dot_dimension_numbers<[1], [0], [0], [1], [0, 0, 1, 1], [], []>} : vector<128x32xbf16>, vector<32x256xbf16>, vector<128x256xf32> -> vector<128x256xf32>
    %c0_5 = arith.constant 0 : index
    %c0_6 = arith.constant 0 : index
    %7 = vector.load %arg4[%c0_5, %c0_6] : memref<1x256xf32, #tpu.memory_space<vmem>>, vector<1x256xf32>
    %8 = vector.broadcast %7 : vector<1x256xf32> to vector<128x256xf32>
    %9 = arith.addf %6, %8 : vector<128x256xf32>
    %cst_7 = arith.constant 0.000000e+00 : f32
    %10 = vector.broadcast %cst_7 : f32 to vector<128x256xf32>
    %11 = arith.maximumf %9, %10 : vector<128x256xf32>
    %c0_8 = arith.constant 0 : index
    %c0_9 = arith.constant 0 : index
    %12 = vector.load %arg5[%c0_8, %c0_9] : memref<1x256xf32, #tpu.memory_space<vmem>>, vector<1x256xf32>
    %13 = vector.broadcast %12 : vector<1x256xf32> to vector<128x256xf32>
    %14 = arith.mulf %11, %13 : vector<128x256xf32>
    %cst_10 = arith.constant dense<0.000000e+00> : vector<128xf32>
    %15 = vector.multi_reduction <add>, %14, %cst_10 [1] : vector<128x256xf32> to vector<128xf32>
    %16 = vector.shape_cast %15 : vector<128xf32> to vector<128x1xf32>
    %c128_i32 = arith.constant 128 : i32
    %17 = arith.muli %arg1, %c128_i32 : i32
    %18 = tpu.iota {dimensions = array<i32: 0>} : vector<128x1xi32>
    %19 = vector.broadcast %17 : i32 to vector<128x1xi32>
    %20 = arith.addi %19, %18 : vector<128x1xi32>
    %c64_i32 = arith.constant 64 : i32
    %21 = vector.broadcast %c64_i32 : i32 to vector<128x1xi32>
    %22 = arith.cmpi slt, %20, %21 : vector<128x1xi32>
    %cst_11 = arith.constant -1.000000e+30 : f32
    %23 = vector.broadcast %cst_11 : f32 to vector<128x1xf32>
    %24 = arith.select %22, %16, %23 : vector<128x1xi1>, vector<128x1xf32>
    %c0_12 = arith.constant 0 : index
    %c0_13 = arith.constant 0 : index
    %25 = vector.load %arg10[%c0_12, %c0_13] : memref<1x1xf32, #tpu.memory_space<vmem>>, vector<1x1xf32>
    %26 = vector.shape_cast %24 : vector<128x1xf32> to vector<1x128x1xf32>
    %cst_14 = arith.constant dense<0xFF800000> : vector<1xf32>
    %27 = vector.multi_reduction <maximumf>, %26, %cst_14 [1, 2] : vector<1x128x1xf32> to vector<1xf32>
    %28 = vector.shape_cast %27 : vector<1xf32> to vector<1x1x1xf32>
    %29 = vector.extract %28[0, 0, 0] : f32 from vector<1x1x1xf32>
    %30 = vector.broadcast %29 : f32 to vector<1x1xf32>
    %31 = arith.maximumf %25, %30 : vector<1x1xf32>
    %32 = arith.subf %25, %31 : vector<1x1xf32>
    %33 = math.exp %32 : vector<1x1xf32>
    %34 = vector.broadcast %31 : vector<1x1xf32> to vector<128x1xf32>
    %35 = arith.subf %24, %34 : vector<128x1xf32>
    %36 = math.exp %35 : vector<128x1xf32>
    %c0_15 = arith.constant 0 : index
    %c0_16 = arith.constant 0 : index
    %37 = vector.load %arg11[%c0_15, %c0_16] : memref<1x1xf32, #tpu.memory_space<vmem>>, vector<1x1xf32>
    %38 = arith.mulf %33, %37 : vector<1x1xf32>
    %39 = vector.shape_cast %36 : vector<128x1xf32> to vector<1x128x1xf32>
    %cst_17 = arith.constant dense<0.000000e+00> : vector<1xf32>
    %40 = vector.multi_reduction <add>, %39, %cst_17 [1, 2] : vector<1x128x1xf32> to vector<1xf32>
    %41 = vector.shape_cast %40 : vector<1xf32> to vector<1x1x1xf32>
    %42 = vector.extract %41[0, 0, 0] : f32 from vector<1x1x1xf32>
    %43 = vector.broadcast %42 : f32 to vector<1x1xf32>
    %44 = arith.addf %38, %43 : vector<1x1xf32>
    %c0_18 = arith.constant 0 : index
    %c0_19 = arith.constant 0 : index
    %45 = vector.load %arg11[%c0_18, %c0_19] : memref<1x1xf32, #tpu.memory_space<vmem>>, vector<1x1xf32>
    tpu.vector_store %arg11[%c0_18, %c0_19], %44 {strides = array<i32>} : memref<1x1xf32, #tpu.memory_space<vmem>>, vector<1x1xf32>,
    %46 = arith.truncf %36 : vector<128x1xf32> to vector<128x1xbf16>
    %47 = arith.truncf %11 : vector<128x256xf32> to vector<128x256xbf16>
    %cst_20 = arith.constant dense<0.000000e+00> : vector<1x256xf32>
    %48 = tpu.matmul %46, %47, %cst_20 {dimension_numbers = #tpu.dot_dimension_numbers<[0], [0], [1], [1], [0, 1, 1, 1], [], []>} : vector<128x1xbf16>, vector<128x256xbf16>, vector<1x256xf32> -> vector<1x256xf32>
    %c0_21 = arith.constant 0 : index
    %c0_22 = arith.constant 0 : index
    %49 = vector.load %arg9[%c0_21, %c0_22] : memref<1x256xf32, #tpu.memory_space<vmem>>, vector<1x256xf32>
    %50 = vector.broadcast %33 : vector<1x1xf32> to vector<1x256xf32>
    %51 = arith.mulf %50, %49 : vector<1x256xf32>
    %52 = arith.addf %51, %48 : vector<1x256xf32>
    %c0_23 = arith.constant 0 : index
    %c0_24 = arith.constant 0 : index
    %53 = vector.load %arg9[%c0_23, %c0_24] : memref<1x256xf32, #tpu.memory_space<vmem>>, vector<1x256xf32>
    tpu.vector_store %arg9[%c0_23, %c0_24], %52 {strides = array<i32>} : memref<1x256xf32, #tpu.memory_space<vmem>>, vector<1x256xf32>,
    %c0_25 = arith.constant 0 : index
    %c0_26 = arith.constant 0 : index
    %54 = vector.load %arg10[%c0_25, %c0_26] : memref<1x1xf32, #tpu.memory_space<vmem>>, vector<1x1xf32>
    tpu.vector_store %arg10[%c0_25, %c0_26], %31 {strides = array<i32>} : memref<1x1xf32, #tpu.memory_space<vmem>>, vector<1x1xf32>,
    %c0_i32_27 = arith.constant 0 : i32
    %55 = arith.cmpi eq, %arg1, %c0_i32_27 : i32
    %56 = arith.extui %55 : i1 to i32
    %c0_i32_28 = arith.constant 0 : i32
    %57 = arith.cmpi ne, %56, %c0_i32_28 : i32
    scf.if %57 {
      %c0_29 = arith.constant 0 : index
      %c0_30 = arith.constant 0 : index
      %58 = vector.load %arg9[%c0_29, %c0_30] : memref<1x256xf32, #tpu.memory_space<vmem>>, vector<1x256xf32>
      %c0_31 = arith.constant 0 : index
      %c0_32 = arith.constant 0 : index
      %59 = vector.load %arg11[%c0_31, %c0_32] : memref<1x1xf32, #tpu.memory_space<vmem>>, vector<1x1xf32>
      %60 = vector.broadcast %59 : vector<1x1xf32> to vector<1x256xf32>
      %61 = arith.divf %58, %60 : vector<1x256xf32>
      %62 = arith.truncf %61 : vector<1x256xf32> to vector<1x256xbf16>
      %c0_33 = arith.constant 0 : index
      %c0_34 = arith.constant 0 : index
      %63 = vector.load %arg6[%c0_33, %c0_34] : memref<256x128xbf16, #tpu.memory_space<vmem>>, vector<256x128xbf16>
      %cst_35 = arith.constant dense<0.000000e+00> : vector<1x128xf32>
      %64 = tpu.matmul %62, %63, %cst_35 {dimension_numbers = #tpu.dot_dimension_numbers<[1], [0], [0], [1], [0, 0, 1, 1], [], []>} : vector<1x256xbf16>, vector<256x128xbf16>, vector<1x128xf32> -> vector<1x128xf32>
      %c0_36 = arith.constant 0 : index
      %c0_37 = arith.constant 0 : index
      %65 = vector.load %arg7[%c0_36, %c0_37] : memref<1x128xf32, #tpu.memory_space<vmem>>, vector<1x128xf32>
      %66 = arith.addf %64, %65 : vector<1x128xf32>
      %67 = arith.negf %66 : vector<1x128xf32>
      %68 = math.exp %67 : vector<1x128xf32>
      %cst_38 = arith.constant 1.000000e+00 : f32
      %69 = vector.broadcast %cst_38 : f32 to vector<1x128xf32>
      %70 = arith.addf %69, %68 : vector<1x128xf32>
      %71 = arith.divf %69, %70 : vector<1x128xf32>
      %c0_39 = arith.constant 0 : index
      %c0_40 = arith.constant 0 : index
      %c0_41 = arith.constant 0 : index
      %72 = vector.load %arg8[%c0_39, %c0_40, %c0_41] : memref<1x1x128xf32, #tpu.memory_space<vmem>>, vector<1x1x128xf32>
      %73 = vector.shape_cast %72 : vector<1x1x128xf32> to vector<1x128xf32>
      %74 = vector.shape_cast %71 : vector<1x128xf32> to vector<1x1x128xf32>
      tpu.vector_store %arg8[%c0_39, %c0_40, %c0_41], %74 {strides = array<i32>} : memref<1x1x128xf32, #tpu.memory_space<vmem>>, vector<1x1x128xf32>,
    } else {
    }
    return
  }
  func.func @transform_0(%arg0: i32, %arg1: i32) -> (i32, i32, i32) {
    %c0_i32 = arith.constant 0 : i32
    %c0_i32_0 = arith.constant 0 : i32
    return %arg0, %arg1, %c0_i32 : i32, i32, i32
  }
  func.func @transform_1(%arg0: i32, %arg1: i32) -> (i32, i32) {
    %c0_i32 = arith.constant 0 : i32
    %c0_i32_0 = arith.constant 0 : i32
    %c0_i32_1 = arith.constant 0 : i32
    return %c0_i32, %c0_i32_0 : i32, i32
  }
  func.func @transform_2(%arg0: i32, %arg1: i32) -> (i32, i32) {
    %c0_i32 = arith.constant 0 : i32
    %c0_i32_0 = arith.constant 0 : i32
    %c0_i32_1 = arith.constant 0 : i32
    return %c0_i32, %c0_i32_0 : i32, i32
  }
  func.func @transform_3(%arg0: i32, %arg1: i32) -> (i32, i32) {
    %c0_i32 = arith.constant 0 : i32
    %c0_i32_0 = arith.constant 0 : i32
    %c0_i32_1 = arith.constant 0 : i32
    return %c0_i32, %c0_i32_0 : i32, i32
  }
  func.func @transform_4(%arg0: i32, %arg1: i32) -> (i32, i32) {
    %c0_i32 = arith.constant 0 : i32
    %c0_i32_0 = arith.constant 0 : i32
    %c0_i32_1 = arith.constant 0 : i32
    return %c0_i32, %c0_i32_0 : i32, i32
  }
  func.func @transform_5(%arg0: i32, %arg1: i32) -> (i32, i32) {
    %c0_i32 = arith.constant 0 : i32
    %c0_i32_0 = arith.constant 0 : i32
    %c0_i32_1 = arith.constant 0 : i32
    return %c0_i32, %c0_i32_0 : i32, i32
  }
  func.func @transform_6(%arg0: i32, %arg1: i32) -> (i32, i32, i32) {
    %c0_i32 = arith.constant 0 : i32
    %c0_i32_0 = arith.constant 0 : i32
    %c0_i32_1 = arith.constant 0 : i32
    return %arg0, %c0_i32, %c0_i32_0 : i32, i32, i32
  }
}

</mosaic_0001>

<bundles_post_ra>
// kernel: detect_model.1
= control target key start
LH: loop header
LB: loop body
LE: loop exit
PB: predicated region body
PF: predicated region fallthrough
CT: control target
= control target key end

     0   :  { %11 = vsyncpa [#allocation6], 0  ;;  %s1902_s0 = inlined_call_operand.vmem [shape: bf16[2,128,32], index: 0, kind: input, shape index: {}]   ;;  %s1903_s1 = inlined_call_operand.vmem [shape: bf16[32,256], index: 1, kind: input, shape index: {}]   ;;  %s1904_s2 = inlined_call_operand.vmem [shape: f32[1,256], index: 2, kind: input, shape index: {}]   ;;  %s1905_s3 = inlined_call_operand.vmem [shape: f32[1,256], index: 3, kind: input, shape index: {}]   ;;  %s1906_s4 = inlined_call_operand.vmem [shape: bf16[256,128], index: 4, kind: input, shape index: {}]   ;;  %s1907_s5 = inlined_call_operand.vmem [shape: f32[1,128], index: 5, kind: input, shape index: {}]   ;;  %s1908_s6 = inlined_call_operand.hbm [shape: f32[2,1,128], index: 6, kind: output, shape index: {}]  }
   0x1   :  { %13 = vsyncpa [#allocation6 + $0x1], 0  ;;  %s1570_s21 = smov 0   ;;  %s1572_s22 = smov 0  }
   0x2   :  { %s1574_s23 = smov 0   ;;  %s1576_s24 = smov 0  }
   0x3   :  { %s1578_s25 = smov 0   ;;  %s1580_s26 = smov 0  }
   0x4 LB: > { %s1187_s27 = sadd.s32 4294967295, %s1530_s26   ;;  %s1188_s28 = sadd.s32 4294967294, %s1530_s26   ;;  %s1530_s26 = sphi %s1580_s26, %s19_s26   ;;  %s1526_s25 = sphi %s1578_s25, %s1917_s25   ;;  %s1522_s24 = sphi %s1576_s24, %s1916_s24   ;;  %s1518_s23 = sphi %s1574_s23, %s1915_s23   ;;  %s1514_s22 = sphi %s1572_s22, %s1914_s22   ;;  %s1510_s21 = sphi %s1570_s21, %s1913_s21  }
   0x5   : > { %s31_s29 = sadd.s32 1, %s1526_s25  ;;  %s171_s30 = sadd.s32 1, %s1518_s23 }
   0x6   : > { %p33_p0 = scmp.ge.s32.totalorder %s31_s29, 2  ;;  %p181_p1 = scmp.ne.s32.totalorder %s1518_s23, %s1514_s22 }
   0x7   : > { %p182_p2 = scmp.eq.s32.totalorder %s1187_s27, 1  ;;  %p187_p3 = scmp.ne.s32.totalorder %s1514_s22, %s1510_s21 }
   0x8   : > { %s1919_s29 = smov (%p33_p0, %s31_s29), 0  ;;  %p188_p5 = scmp.eq.s32.totalorder %s1188_s28, 1 }
   0x9   : > { %p1610_p4 = por %p182_p2, %p181_p1  ;;  %s168_s8 = ssub.s32 %s1526_s25, %s1919_s29 }
   0xa   : > { %p1191_p6 = scmp.ge.s32.totalorder %s1530_s26, 1  ;;  %p169_p7 = scmp.eq.s32.totalorder %s168_s8, 0 }
   0xb   : > { %p1617_p8 = por %p188_p5, %p187_p3  ;;  %p234_p9 = scmp.lt.s32.totalorder %s1530_s26, 3 }
   0xc   : > { %s1623_s10 = scalar_select %p169_p7, %s1518_s23, %s171_s30  }
   0xd   : > { %p235_p10 = pnand %p1191_p6, %p234_p9 }
   0xe   : > { %p268_p11 = scmp.lt.s32.totalorder (!%p235_p10), %s1522_s24, 1  ;;  %s265_s16 = sand.u32 (!%p235_p10), 1, %s1514_s22  }
   0xf   : > { %238 = sbr.rel (%p235_p10) target bundleno = 953 (0x3b9), region = 44  ;;  %s1114_s19 = scalar_lea.hbm (!%p235_p10), %s1908_s6, %s1522_s24 }
  0x10   : > { %s266_s20 = scalar_lea.vmem (!%p235_p10), [#allocation5], %s265_s16 }
  0x11   : > { %s1116_s27 = sshll.u32 (!%p235_p10), %s266_s20, 4  ;;  %s1117_s27 = int_to_ptr.vmem [resolvable:$true] %s1116_s27 }
  0x14   : > { %v1236_v0 = vld [vmem:[%s1903_s1 + $0x10] sm:$0xf]  ;;  %v1337_v1 = vld [vmem:[%s1903_s1 + $0x14] sm:$0xf0]  ;;  %v1336_v2 = vld [vmem:[%s1903_s1 + $0x14] sm:$0xf] }
  0x15   : > { %v1237_v3 = vor.u32 %v1337_v1, %v1236_v0  ;;  %v1238_v4 = vld [vmem:[%s1903_s1 + $0x18] sm:$0xf0]  ;;  %v1228_v5 = vld [vmem:[%s1903_s1] sm:$0xf]  ;;  %v1335_v6 = vld [vmem:[%s1903_s1 + $0x4] sm:$0xf0] }
  0x16   : > { %v1241_v7 = vor.u32 %v1336_v2, %v1238_v4  ;;  %v1334_v8 = vld [vmem:[%s1903_s1 + $0x4] sm:$0xf]  ;;  %v1230_v9 = vld [vmem:[%s1903_s1 + $0x8] sm:$0xf0]  ;;  %v1229_v10 = vor.u32 %v1335_v6, %v1228_v5  ;;  %s269_s13 = scalar_select %p268_p11, %s1522_s24, 1  ;;  %vm376_vm0 = vcmask 261120  }
  0x17   : > { %407 = vmatpush.bf16.msra.mxu0 %v1237_v3  ;;  %1354 = vmatpush.bf16.msra.mxu2 %v1237_v3  ;;  %v1233_v11 = vor.u32 %v1334_v8, %v1230_v9  ;;  %v310_v20 = vld [vmem:[%s1904_s2] sm:$0x3]  ;;  %vm287_vm1 = vcmask 0   ;;  %vm765_vm2 = vcmask 7168   ;;  %vm887_vm4 = vcmask 1040384  }
  0x18   : > { %456 = vmatpush.bf16.msra.mxu1 %v1241_v7  ;;  %1356 = vmatpush.bf16.msra.mxu3 %v1241_v7  ;;  %s1325_s14 = sshll.u32 %s269_s13, 6  ;;  %v1673_v21 = vperm.slane %v310_v20, 0  ;;  %v1675_v22 = vperm.slane %v310_v20, 1  ;;  %v531_v23 = vld [vmem:[%s1905_s3] sm:$0x3]  ;;  %s1472_s13 = scalar_lea.hbm %s1908_s6, 2 }
  0x19   : > { %s275_s17 = scalar_lea.vmem %s1902_s0, %s1325_s14  ;;  %v1681_v27 = vperm.slane %v531_v23, 0  ;;  %v1684_v29 = vperm.slane %v531_v23, 1 }
  0x1a   : > { %v1326_v12 = vld [vmem:[%s275_s17] sm:$0xff]  ;;  %v1327_v13 = vld [vmem:[%s275_s17 + $0x8] sm:$0xff]  ;;  %v1332_v14 = vld [vmem:[%s275_s17 + $0x30] sm:$0xff] }
  0x1b   : > { %408 = vmatpush.bf16.msra.mxu0 %v1229_v10  ;;  %1355 = vmatpush.bf16.msra.mxu2 %v1229_v10  ;;  %v1328_v15 = vld [vmem:[%s275_s17 + $0x10] sm:$0xff]  ;;  %v1333_v16 = vld [vmem:[%s275_s17 + $0x38] sm:$0xff]  ;;  %v1330_v18 = vld [vmem:[%s275_s17 + $0x20] sm:$0xff] }
  0x1c   : > { %457 = vmatpush.bf16.msra.mxu1 %v1233_v11  ;;  %1357 = vmatpush.bf16.msra.mxu3 %v1233_v11  ;;  %v1329_v17 = vld [vmem:[%s275_s17 + $0x18] sm:$0xff]  ;;  %v1331_v19 = vld [vmem:[%s275_s17 + $0x28] sm:$0xff] }
  0x1e   : > { %1242 = vmatmul.msk.bf16.vlgmr.msra.gmra.mxu0 %vm376_vm0, %v1326_v12  ;;  %1248 = vmatmul.msk.bf16.vlgmr.msra.gmra.mxu2 %vm376_vm0, %v1332_v14 }
  0x1f   : > { %1250 = vmatmul.msk.bf16.vlgmr.msra.gmra.mxu1 %vm376_vm0, %v1326_v12  ;;  %1256 = vmatmul.msk.bf16.vlgmr.msra.gmra.mxu3 %vm376_vm0, %v1332_v14 }
  0x2e   : > { %1243 = vmatmul.msk.bf16.gmra.mxu0 %vm376_vm0, %v1327_v13  ;;  %1249 = vmatmul.msk.bf16.gmra.mxu2 %vm376_vm0, %v1333_v16 }
  0x2f   : > { %1251 = vmatmul.msk.bf16.gmra.mxu1 %vm376_vm0, %v1327_v13  ;;  %1257 = vmatmul.msk.bf16.gmra.mxu3 %vm376_vm0, %v1333_v16 }
  0x3e   : > { %1244 = vmatmul.msk.bf16.gmra.mxu0 %vm376_vm0, %v1328_v15 }
  0x3f   : > { %1252 = vmatmul.msk.bf16.gmra.mxu1 %vm376_vm0, %v1328_v15 }
  0x4e   : > { %1245 = vmatmul.msk.bf16.gmra.mxu0 %vm376_vm0, %v1329_v17 }
  0x4f   : > { %1253 = vmatmul.msk.bf16.gmra.mxu1 %vm376_vm0, %v1329_v17 }
  0x5e   : > { %1246 = vmatmul.msk.bf16.gmra.mxu0 %vm376_vm0, %v1330_v18 }
  0x5f   : > { %1254 = vmatmul.msk.bf16.gmra.mxu1 %vm376_vm0, %v1330_v18 }
  0x6e   : > { %1247 = vmatmul.msk.bf16.gmra.mxu0 %vm376_vm0, %v1331_v19 }
  0x6f   : > { %1255 = vmatmul.msk.bf16.gmra.mxu1 %vm376_vm0, %v1331_v19 }
  0x9b   : > { %v410_v24 = vpop.f32.mrf.mxu0 }
  0x9c   : > { %v411_v25 = vadd.f32 %v410_v24, %v1673_v21  ;;  %v459_v26 = vpop.f32.mrf.mxu1 }
  0x9d   : > { %v460_v28 = vadd.f32 %v459_v26, %v1675_v22 }
  0x9e   : > { %v499_v30 = vmax.f32 %v411_v25, 0.0 }
  0x9f   : > { %v500_v31 = vmax.f32 %v460_v28, 0.0 }
  0xa0   : > { %v537_v32 = vmul.f32 %v1681_v27, %v499_v30 }
  0xa1   : > { %v538_v33 = vmul.f32 %v1684_v29, %v500_v31  ;;  %v440_v58 = vpop.f32.mrf.mxu2 }
  0xa2   : > { %v489_v60 = vpop.f32.mrf.mxu3 }
  0xa3   : > { %v412_v34 = vpop.f32.mrf.mxu0  ;;  %v569_v35 = vadd.f32 %v538_v33, %v537_v32 }
  0xa4   : > { %v413_v36 = vadd.f32 %v412_v34, %v1673_v21  ;;  %v461_v37 = vpop.f32.mrf.mxu1 }
  0xa5   : > { %v462_v38 = vadd.f32 %v461_v37, %v1675_v22  ;;  %570 = vadd.xlane.f32.xlu0 %v569_v35  ;;  %v441_v35 = vadd.f32 %v440_v58, %v1673_v21 }
  0xa6   : > { %v501_v39 = vmax.f32 %v413_v36, 0.0  ;;  %v490_v36 = vadd.f32 %v489_v60, %v1675_v22 }
  0xa7   : > { %v502_v40 = vmax.f32 %v462_v38, 0.0 }
  0xa8   : > { %v539_v41 = vmul.f32 %v1681_v27, %v501_v39  ;;  %v1691_v42 = vpack.c.bf16 %v501_v39, %v499_v30 }
  0xa9   : > { %v540_v43 = vmul.f32 %v1684_v29, %v502_v40  ;;  %v1694_v44 = vpack.c.bf16 %v502_v40, %v500_v31  ;;  %v442_v7 = vpop.f32.mrf.mxu2 }
  0xaa   : > { %v491_v9 = vpop.f32.mrf.mxu3  ;;  %v443_v37 = vadd.f32 %v442_v7, %v1673_v21 }
  0xab   : > { %v415_v45 = vpop.f32.mrf.mxu0  ;;  %v572_v46 = vadd.f32 %v540_v43, %v539_v41  ;;  %v492_v40 = vadd.f32 %v491_v9, %v1675_v22 }
  0xac   : > { %v416_v47 = vadd.f32 %v415_v45, %v1673_v21  ;;  %v464_v48 = vpop.f32.mrf.mxu1 }
  0xad   : > { %v465_v49 = vadd.f32 %v464_v48, %v1675_v22  ;;  %573 = vadd.xlane.f32.xlu0 %v572_v46 }
  0xae   : > { %v503_v50 = vmax.f32 %v416_v47, 0.0 }
  0xaf   : > { %v504_v51 = vmax.f32 %v465_v49, 0.0 }
  0xb0   : > { %v541_v52 = vmul.f32 %v1681_v27, %v503_v50 }
  0xb1   : > { %v542_v53 = vmul.f32 %v1684_v29, %v504_v51  ;;  %v445_v18 = vpop.f32.mrf.mxu2 }
  0xb2   : > { %v494_v20 = vpop.f32.mrf.mxu3  ;;  %v446_v28 = vadd.f32 %v445_v18, %v1673_v21 }
  0xb3   : > { %v417_v54 = vpop.f32.mrf.mxu0  ;;  %v575_v55 = vadd.f32 %v542_v53, %v541_v52  ;;  %v495_v30 = vadd.f32 %v494_v20, %v1675_v22  ;;  %v523_v52 = vmax.f32 %v441_v35, 0.0  ;;  %v524_v53 = vmax.f32 %v490_v36, 0.0 }
  0xb4   : > { %v418_v56 = vadd.f32 %v417_v54, %v1673_v21  ;;  %v466_v57 = vpop.f32.mrf.mxu1  ;;  %v527_v41 = vmax.f32 %v446_v28, 0.0 }
  0xb5   : > { %v467_v59 = vadd.f32 %v466_v57, %v1675_v22  ;;  %576 = vadd.xlane.f32.xlu1 %v575_v55  ;;  %v528_v47 = vmax.f32 %v495_v30, 0.0  ;;  %v526_v57 = vmax.f32 %v492_v40, 0.0 }
  0xb6   : > { %v505_v61 = vmax.f32 %v418_v56, 0.0  ;;  %v525_v56 = vmax.f32 %v443_v37, 0.0 }
  0xb7   : > { %v506_v62 = vmax.f32 %v467_v59, 0.0 }
  0xb8   : > { %v543_v63 = vmul.f32 %v1681_v27, %v505_v61  ;;  %v1703_v0 = vpack.c.bf16 %v505_v61, %v503_v50 }
  0xb9   : > { %v544_v1 = vmul.f32 %v1684_v29, %v506_v62  ;;  %v1706_v2 = vpack.c.bf16 %v506_v62, %v504_v51  ;;  %v447_v38 = vpop.f32.mrf.mxu2 }
  0xba   : > { %v448_v43 = vadd.f32 %v447_v38, %v1673_v21  ;;  %v496_v45 = vpop.f32.mrf.mxu3 }
  0xbb   : > { %v420_v3 = vpop.f32.mrf.mxu0  ;;  %v578_v4 = vadd.f32 %v544_v1, %v543_v63  ;;  %v497_v48 = vadd.f32 %v496_v45, %v1675_v22 }
  0xbc   : > { %v1709_v5 = vadd.f32 %v420_v3, %v1673_v21  ;;  %v469_v6 = vpop.f32.mrf.mxu1  ;;  %v529_v50 = vmax.f32 %v448_v43, 0.0  ;;  %v830_v3 = vpack.c.bf16 %v525_v56, %v523_v52 }
  0xbd   : > { %v1712_v8 = vadd.f32 %v469_v6, %v1675_v22  ;;  %579 = vadd.xlane.f32.xlu1 %v578_v4  ;;  %v530_v54 = vmax.f32 %v497_v48, 0.0  ;;  %v831_v4 = vpack.c.bf16 %v526_v57, %v524_v53 }
  0xbe   : > { %v507_v10 = vmax.f32 %v1709_v5, 0.0  ;;  %v832_v58 = vpack.c.bf16 %v529_v50, %v527_v41 }
  0xbf   : > { %v508_v11 = vmax.f32 %v1712_v8, 0.0  ;;  %v833_v59 = vpack.c.bf16 %v530_v54, %v528_v47 }
  0xc0   : > { %v545_v12 = vmul.f32 %v1681_v27, %v507_v10  ;;  %850 = vmatpush.bf16.msrb.mxu2 %v832_v58 }
  0xc1   : > { %v546_v13 = vmul.f32 %v1684_v29, %v508_v11  ;;  %863 = vmatpush.bf16.msrb.mxu3 %v833_v59 }
  0xc3   : > { %v422_v14 = vpop.f32.mrf.mxu0  ;;  %v581_v15 = vadd.f32 %v546_v13, %v545_v12 }
  0xc4   : > { %v1723_v16 = vadd.f32 %v422_v14, %v1673_v21  ;;  %v471_v17 = vpop.f32.mrf.mxu1  ;;  %851 = vmatpush.bf16.msrb.mxu2 %v830_v3 }
  0xc5   : > { %v1726_v19 = vadd.f32 %v471_v17, %v1675_v22  ;;  %582 = vadd.xlane.f32.xlu2 %v581_v15  ;;  %864 = vmatpush.bf16.msrb.mxu3 %v831_v4 }
  0xc6   : > { %v509_v23 = vmax.f32 %v1723_v16, 0.0 }
  0xc7   : > { %v510_v24 = vmax.f32 %v1726_v19, 0.0 }
  0xc8   : > { %v547_v25 = vmul.f32 %v1681_v27, %v509_v23 }
  0xc9   : > { %v548_v26 = vmul.f32 %v1684_v29, %v510_v24  ;;  %v823_v54 = vpack.c.bf16 %v510_v24, %v508_v11 }
  0xcb   : > { %v425_v31 = vpop.f32.mrf.mxu0  ;;  %v584_v32 = vadd.f32 %v548_v26, %v547_v25 }
  0xcc   : > { %v1739_v33 = vadd.f32 %v425_v31, %v1673_v21  ;;  %v474_v34 = vpop.f32.mrf.mxu1 }
  0xcd   : > { %v1745_v39 = vadd.f32 %v474_v34, %v1675_v22  ;;  %585 = vadd.xlane.f32.xlu2 %v584_v32 }
  0xce   : > { %v511_v46 = vmax.f32 %v1739_v33, 0.0 }
  0xcf   : > { %v512_v49 = vmax.f32 %v1745_v39, 0.0 }
  0xd0   : > { %v549_v51 = vmul.f32 %v1681_v27, %v511_v46 }
  0xd1   : > { %v550_v55 = vmul.f32 %v1684_v29, %v512_v49 }
  0xd3   : > { %v427_v60 = vpop.f32.mrf.mxu0  ;;  %v587_v61 = vadd.f32 %v550_v55, %v549_v51 }
  0xd4   : > { %v428_v62 = vadd.f32 %v427_v60, %v1673_v21  ;;  %v476_v63 = vpop.f32.mrf.mxu1 }
  0xd5   : > { %v477_v1 = vadd.f32 %v476_v63, %v1675_v22  ;;  %588 = vadd.xlane.f32.xlu0 %v587_v61 }
  0xd6   : > { %v513_v6 = vmax.f32 %v428_v62, 0.0 }
  0xd7   : > { %v514_v7 = vmax.f32 %v477_v1, 0.0 }
  0xd8   : > { %v551_v9 = vmul.f32 %v1681_v27, %v513_v6 }
  0xd9   : > { %v552_v12 = vmul.f32 %v1684_v29, %v514_v7  ;;  %v825_v53 = vpack.c.bf16 %v514_v7, %v512_v49 }
  0xdb   : > { %v430_v13 = vpop.f32.mrf.mxu0  ;;  %v590_v14 = vadd.f32 %v552_v12, %v551_v9  ;;  %v1533_v12 = vmov 0.0  }
  0xdc   : > { %v479_v15 = vpop.f32.mrf.mxu1  ;;  %v431_v30 = vadd.f32 %v430_v13, %v1673_v21  ;;  %289 = vst.msk [vmem:[#allocation4] sm:$0x1] %vm287_vm1, %v1533_v12 }
  0xdd   : > { %591 = vadd.xlane.f32.xlu1 %v590_v14  ;;  %v480_v27 = vadd.f32 %v479_v15, %v1675_v22 }
  0xde   : > { %v515_v39 = vmax.f32 %v431_v30, 0.0 }
  0xdf   : > { %v516_v43 = vmax.f32 %v480_v27, 0.0 }
  0xe3   : > { %v432_v17 = vpop.f32.mrf.mxu0 }
  0xe4   : > { %v481_v18 = vpop.f32.mrf.mxu1  ;;  %v433_v31 = vadd.f32 %v432_v17, %v1673_v21 }
  0xe5   : > { %v482_v29 = vadd.f32 %v481_v18, %v1675_v22 }
  0xe6   : > { %v517_v40 = vmax.f32 %v433_v31, 0.0 }
  0xe7   : > { %v518_v45 = vmax.f32 %v482_v29, 0.0 }
  0xe8   : > { %v826_v51 = vpack.c.bf16 %v517_v40, %v515_v39 }
  0xe9   : > { %v827_v52 = vpack.c.bf16 %v518_v45, %v516_v43 }
  0xeb   : > { %v435_v20 = vpop.f32.mrf.mxu0 }
  0xec   : > { %v484_v25 = vpop.f32.mrf.mxu1  ;;  %v436_v26 = vadd.f32 %v435_v20, %v1673_v21 }
  0xed   : > { %v485_v28 = vadd.f32 %v484_v25, %v1675_v22 }
  0xee   : > { %v519_v34 = vmax.f32 %v436_v26, 0.0 }
  0xef   : > { %v520_v37 = vmax.f32 %v485_v28, 0.0 }
  0xf3   : > { %v437_v32 = vpop.f32.mrf.mxu0 }
  0xf4   : > { %v438_v35 = vadd.f32 %v437_v32, %v1673_v21  ;;  %v486_v36 = vpop.f32.mrf.mxu1  ;;  %v824_v21 = vpack.c.bf16 %v513_v6, %v511_v46 }
  0xf5   : > { %v487_v38 = vadd.f32 %v486_v36, %v1675_v22  ;;  %v822_v22 = vpack.c.bf16 %v509_v23, %v507_v10  ;;  %v1532_v23 = vmov -1e+30  }
  0xf6   : > { %v521_v41 = vmax.f32 %v438_v35, 0.0  ;;  %288 = vst.msk [vmem:[#allocation3] sm:$0x1] %vm287_vm1, %v1532_v23 }
  0xf7   : > { %v522_v47 = vmax.f32 %v487_v38, 0.0 }
  0xf8   : > { %v828_v48 = vpack.c.bf16 %v521_v41, %v519_v34 }
  0xf9   : > { %v829_v50 = vpack.c.bf16 %v522_v47, %v520_v37 }
  0xfa   : > { %852 = vmatpush.bf16.msrb.mxu2 %v828_v48 }
  0xfb   : > { %865 = vmatpush.bf16.msrb.mxu3 %v829_v50 }
  0xfd   : > { %v1785_v13 = vld [vmem:[#allocation3] sm:$0x1] }
  0xfe   : > { %853 = vmatpush.bf16.msrb.mxu2 %v826_v51 }
  0xff   : > { %866 = vmatpush.bf16.msrb.mxu3 %v827_v52 }
 0x102   : > { %854 = vmatpush.bf16.msrb.mxu2 %v824_v21 }
 0x103   : > { %867 = vmatpush.bf16.msrb.mxu3 %v825_v53 }
 0x106   : > { %855 = vmatpush.bf16.msrb.mxu2 %v822_v22 }
 0x107   : > { %868 = vmatpush.bf16.msrb.mxu3 %v823_v54 }
 0x10a   : > { %856 = vmatpush.bf16.msrb.mxu2 %v1703_v0 }
 0x10b   : > { %869 = vmatpush.bf16.msrb.mxu3 %v1706_v2 }
 0x10e   : > { %857 = vmatpush.bf16.msrb.mxu2 %v1691_v42 }
 0x10f   : > { %870 = vmatpush.bf16.msrb.mxu3 %v1694_v44 }
 0x118   : > { %v571_v33 = vpop.xlane.xlu0 %570 }
 0x120   : > { %v574_v16 = vpop.xlane.xlu0 %573 }
 0x128   : > { %v577_v5 = vpop.xlane.xlu1 %576 }
 0x130   : > { %v580_v10 = vpop.xlane.xlu1 %579 }
 0x138   : > { %v583_v46 = vpop.xlane.xlu2 %582 }
 0x139   : > { %v685_v24 = vmax.f32 %v571_v33, %v583_v46 }
 0x13b   : > { %v689_v55 = vmax.f32 %v685_v24, -1e+30 }
 0x13d   : > { %v693_v58 = vmax.f32 %v689_v55, -1e+30 }
 0x140   : > { %v586_v8 = vpop.xlane.xlu2 %585 }
 0x141   : > { %v686_v19 = vmax.f32 %v574_v16, %v586_v8 }
 0x143   : > { %v690_v49 = vmax.f32 %v686_v19, -1e+30 }
 0x145   : > { %v694_v44 = vmax.f32 %v690_v49, -1e+30 }
 0x147   : > { %v697_v61 = vmax.f32 %v693_v58, %v694_v44 }
 0x148   : > { %v589_v11 = vpop.xlane.xlu0 %588 }
 0x149   : > { %v687_v0 = vmax.f32 %v577_v5, %v589_v11 }
 0x14b   : > { %v691_v42 = vmax.f32 %v687_v0, -1e+30 }
 0x14d   : > { %v695_v59 = vmax.f32 %v691_v42, -1e+30 }
 0x150   : > { %v592_v2 = vpop.xlane.xlu1 %591 }
 0x151   : > { %v688_v56 = vmax.f32 %v580_v10, %v592_v2 }
 0x153   : > { %v692_v57 = vmax.f32 %v688_v56, -1e+30 }
 0x155   : > { %v696_v60 = vmax.f32 %v692_v57, -1e+30 }
 0x157   : > { %v698_v62 = vmax.f32 %v695_v59, %v696_v60  ;;  %v1534_v59 = vmov 0  }
 0x158   : > { %1424 = vset.pattern.permute.xlu2 %v1534_v59  ;;  %1423 = vset.pattern.permute.xlu1 %v1534_v59 }
 0x159   : > { %v699_v63 = vmax.f32 %v697_v61, %v698_v62 }
 0x15b   : > { %v700_v1 = vrot.slane %v699_v63, 4 }
 0x15d   : > { %v701_v3 = vmax.f32 %v699_v63, %v700_v1 }
 0x15f   : > { %v702_v4 = vrot.slane %v701_v3, 2 }
 0x161   : > { %v703_v6 = vmax.f32 %v701_v3, %v702_v4 }
 0x163   : > { %v704_v7 = vrot.slane %v703_v6, 1 }
 0x165   : > { %v705_v9 = vmax.f32 %v703_v6, %v704_v7 }
 0x167   : > { %1361 = vpush %v705_v9 }
 0x198   : > { %s1362_s28 = spop %1361 }
 0x199   : > { %v707_v14 = vstv %s1362_s28  ;;  %s1118_s28 = sshll.u32 %s1114_s19, 4  ;;  %s1119_s28 = int_to_ptr.hbm [resolvable:$true] %s1118_s28 }
 0x19a   : > { %v1788_v15 = vmax.f32 %v1785_v13, %v707_v14  ;;  %s1466_s24 = sshra.s32 %s1119_s28, 4  ;;  %s1467_s24 = int_to_ptr.hbm [resolvable:$true] %s1466_s24 }
 0x19b   : > { %s1468_s8 = scalar_lea.hbm %s1467_s24, 1  ;;  %p1473_p1 = scmp.lt.s32.totalorder %s1467_s24, %s1908_s6 }
 0x19c   : > { %v713_v17 = vperm.slane %v1788_v15, 0  ;;  %896 = vst.msk [vmem:[#allocation3] sm:$0x1] %vm287_vm1, %v1788_v15  ;;  %v709_v4 = vsub.f32 %v1785_v13, %v1788_v15  ;;  %p1469_p12 = scmp.ne.s32.totalorder %s1467_s24, %s1468_s8  ;;  %p1474_p2 = scmp.lt.s32.totalorder %s1472_s13, %s1468_s8 }
 0x19e   : > { %v715_v18 = vsub.f32 %v571_v33, %v713_v17  ;;  %v716_v20 = vsub.f32 %v574_v16, %v713_v17  ;;  %v717_v25 = vsub.f32 %v577_v5, %v713_v17  ;;  %v718_v26 = vsub.f32 %v580_v10, %v713_v17  ;;  %p1470_p13 = pnand %p1469_p12, %p1610_p4  ;;  %p1475_p3 = por %p1474_p2, %p1473_p1 }
 0x19f   : > { %v719_v28 = vsub.f32 %v583_v46, %v713_v17  ;;  %v720_v32 = vsub.f32 %v586_v8, %v713_v17  ;;  %v721_v35 = vsub.f32 %v589_v11, %v713_v17  ;;  %v722_v36 = vsub.f32 %v592_v2, %v713_v17 }
 0x1a0   : > { %v731_v30 = vmul.f32 1.442695, %v715_v18  ;;  %v733_v31 = vmul.f32 1.442695, %v716_v20  ;;  %v735_v27 = vmul.f32 1.442695, %v717_v25  ;;  %p1471_p0 = pneg %p1470_p13 }
 0x1a1   : > { %v737_v29 = vmul.f32 1.442695, %v718_v26  ;;  %v739_v34 = vmul.f32 1.442695, %v719_v28  ;;  %v741_v37 = vmul.f32 1.442695, %v720_v32 }
 0x1a2   : > { %1426 = vpow2.f32 %v731_v30  ;;  %v723_v38 = vsub.f32 -1e+30, %v713_v17  ;;  %v743_v39 = vmul.f32 1.442695, %v721_v35  ;;  %v745_v45 = vmul.f32 1.442695, %v722_v36  ;;  %p1476_p5 = pnand %p1475_p3, %p1471_p0 }
 0x1a3   : > { %1428 = vpow2.f32 %v733_v31  ;;  %v710_v6 = vmul.f32 1.442695, %v709_v4  ;;  %v282_v17 = vlaneseq  ;;  %v1345_v35 = vld [vmem:[%s1906_s4 + $0x38] sm:$0xff] }
 0x1a4   : > { %1430 = vpow2.f32 %v735_v27  ;;  %v747_v21 = vmul.f32 1.442695, %v723_v38  ;;  %v763_v27 = vld [vmem:[#allocation4] sm:$0x1]  ;;  %v1353_v36 = vld [vmem:[%s1906_s4 + $0x78] sm:$0xff]  ;;  %1059 = vmatpush.bf16.msra.mxu2 %v1345_v35  ;;  %v1352_v38 = vld [vmem:[%s1906_s4 + $0x70] sm:$0xff] }
 0x1a5   : > { %1432 = vpow2.f32 %v737_v29  ;;  %vm1804_vm3 = vcmp.lt.s32.totalorder %v282_v17, 256  ;;  %1072 = vmatpush.bf16.msra.mxu3 %v1353_v36 }
 0x1a6   : > { %1434 = vpow2.f32 %v739_v34  ;;  %286 = vst.msk [vmem:[#allocation2] sm:$0x3] %vm1804_vm3, %v1533_v12 }
 0x1a7   : > { %1436 = vpow2.f32 %v741_v37  ;;  %v1344_v37 = vld [vmem:[%s1906_s4 + $0x30] sm:$0xff] }
 0x1a8   : > { %v1427_v40 = vpop.eup %1426  ;;  %1438 = vpow2.f32 %v743_v39  ;;  %1060 = vmatpush.bf16.msra.mxu2 %v1344_v37 }
 0x1a9   : > { %v1429_v41 = vpop.eup %1428  ;;  %v766_v43 = vsel %vm765_vm2, %v1427_v40, 0.0  ;;  %1440 = vpow2.f32 %v745_v45  ;;  %1073 = vmatpush.bf16.msra.mxu3 %v1352_v38 }
 0x1aa   : > { %v1431_v47 = vpop.eup %1430  ;;  %v767_v48 = vsel %vm765_vm2, %v1429_v41, 0.0  ;;  %v810_v50 = vpack.c.bf16 %v1429_v41, %v1427_v40  ;;  %1442 = vpow2.f32 %v747_v21  ;;  %v1351_v21 = vld [vmem:[%s1906_s4 + $0x68] sm:$0xff] }
 0x1ab   : > { %v1433_v51 = vpop.eup %1432  ;;  %v768_v52 = vadd.f32 %v767_v48, %v766_v43  ;;  %v769_v53 = vsel %vm765_vm2, %v1431_v47, 0.0  ;;  %1444 = vpow2.f32 %v710_v6  ;;  %v962_v6 = vld [vmem:[%s1907_s5] sm:$0x1] }
 0x1ac   : > { %834 = vxpose.xlu0.c.b16.start [1/8] (narrow) %v810_v50, 16  ;;  %v1435_v22 = vpop.eup %1434  ;;  %v771_v33 = vsel %vm765_vm2, %v1433_v51, 0.0  ;;  %v811_v44 = vpack.c.bf16 %v1433_v51, %v1431_v47 }
 0x1ad   : > { %v770_v54 = vadd.f32 %v769_v53, %v768_v52  ;;  %v1437_v5 = vpop.eup %1436  ;;  %v773_v16 = vsel %vm765_vm2, %v1435_v22, 0.0  ;;  %v876_v41 = vld [vmem:[#allocation2] sm:$0x3]  ;;  %v1343_v52 = vld [vmem:[%s1906_s4 + $0x28] sm:$0xff]  ;;  %1074 = vmatpush.bf16.msra.mxu3 %v1351_v21 }
 0x1ae   : > { %v1439_v10 = vpop.eup %1438  ;;  %v775_v23 = vsel %vm765_vm2, %v1437_v5, 0.0  ;;  %v812_v3 = vpack.c.bf16 %v1437_v5, %v1435_v22  ;;  %1061 = vmatpush.bf16.msra.mxu2 %v1343_v52  ;;  %v1341_v5 = vld [vmem:[%s1906_s4 + $0x18] sm:$0xff] }
 0x1af   : > { %v772_v46 = vadd.f32 %v771_v33, %v770_v54  ;;  %v1441_v11 = vpop.eup %1440  ;;  %v777_v24 = vsel %vm765_vm2, %v1439_v10, 0.0  ;;  %v1342_v54 = vld [vmem:[%s1906_s4 + $0x20] sm:$0xff] }
 0x1b0   : > { %v1443_v0 = vpop.eup %1442  ;;  %v779_v2 = vsel %vm765_vm2, %v1441_v11, 0.0  ;;  %v813_v7 = vpack.c.bf16 %v1441_v11, %v1439_v10  ;;  %v1350_v33 = vld [vmem:[%s1906_s4 + $0x60] sm:$0xff]  ;;  %v1348_v10 = vld [vmem:[%s1906_s4 + $0x50] sm:$0xff] }
 0x1b1   : > { %v774_v8 = vadd.f32 %v773_v16, %v772_v46  ;;  %v781_v42 = vsel %vm765_vm2, %v1443_v0, 0.0  ;;  %v1445_v9 = vpop.eup %1444  ;;  %v814_v14 = vpack.c.bf16 %v1443_v0, %v1443_v0  ;;  %1075 = vmatpush.bf16.msra.mxu3 %v1350_v33  ;;  %v1349_v46 = vld [vmem:[%s1906_s4 + $0x58] sm:$0xff]  ;;  %v1340_v16 = vld [vmem:[%s1906_s4 + $0x10] sm:$0xff]  ;;  %v1338_v11 = vld [vmem:[%s1906_s4] sm:$0xff] }
 0x1b2   : > { %v764_v29 = vmul.f32 %v1445_v9, %v763_v27  ;;  %1062 = vmatpush.bf16.msra.mxu2 %v1342_v54 }
 0x1b3   : > { %v776_v19 = vadd.f32 %v775_v23, %v774_v8  ;;  %v1339_v8 = vld [vmem:[%s1906_s4 + $0x8] sm:$0xff] }
 0x1b4   : > { %v1347_v23 = vld [vmem:[%s1906_s4 + $0x48] sm:$0xff] }
 0x1b5   : > { %v778_v49 = vadd.f32 %v777_v24, %v776_v19  ;;  %1076 = vmatpush.bf16.msra.mxu3 %v1349_v46  ;;  %v1346_v19 = vld [vmem:[%s1906_s4 + $0x40] sm:$0xff] }
 0x1b6   : > { %1063 = vmatpush.bf16.msra.mxu2 %v1341_v5 }
 0x1b7   : > { %v780_v55 = vadd.f32 %v779_v2, %v778_v49 }
 0x1b9   : > { %v782_v56 = vadd.f32 %v781_v42, %v780_v55  ;;  %1077 = vmatpush.bf16.msra.mxu3 %v1348_v10 }
 0x1ba   : > { %1064 = vmatpush.bf16.msra.mxu2 %v1340_v16 }
 0x1bb   : > { %v784_v57 = vadd.f32 %v782_v56, %v781_v42 }
 0x1bc   : > { %835 = vxpose.xlu0.c.b16.cont [2/8] (narrow) %v811_v44, 16 }
 0x1bd   : > { %v786_v58 = vadd.f32 %v784_v57, %v781_v42  ;;  %1078 = vmatpush.bf16.msra.mxu3 %v1347_v23 }
 0x1be   : > { %1065 = vmatpush.bf16.msra.mxu2 %v1339_v8 }
 0x1bf   : > { %v788_v60 = vadd.f32 %v786_v58, %v781_v42 }
 0x1c1   : > { %v790_v61 = vadd.f32 %v788_v60, %v781_v42  ;;  %1079 = vmatpush.bf16.msra.mxu3 %v1346_v19 }
 0x1c2   : > { %1066 = vmatpush.bf16.msra.mxu2 %v1338_v11 }
 0x1c3   : > { %v792_v62 = vadd.f32 %v790_v61, %v781_v42 }
 0x1c5   : > { %v794_v63 = vadd.f32 %v792_v62, %v781_v42 }
 0x1c7   : > { %v796_v1 = vadd.f32 %v794_v63, %v781_v42 }
 0x1c9   : > { %797 = vadd.xlane.f32.xlu2 %v796_v1 }
 0x1cc   : > { %836 = vxpose.xlu0.c.b16.cont [3/8] (narrow) %v812_v3, 16 }
 0x1dc   : > { %837 = vxpose.xlu0.c.b16.cont [4/8] (narrow) %v813_v7, 16 }
 0x1e1   : > { %879 = vperm.xlu2 %1424, %v1445_v9  }
 0x1ec   : > { %838 = vxpose.xlu0.c.b16.cont [5/8] (narrow) %v814_v14, 16 }
 0x1fc   : > { %839 = vxpose.xlu0.c.b16.cont [6/8] (narrow) %v814_v14, 16 }
 0x20c   : > { %840 = vxpose.xlu0.c.b16.cont [7/8] (narrow) %v814_v14, 16 }
 0x21c   : > { %841 = vxpose.xlu0.c.b16.end [8/8] (narrow) %v814_v14, 16 }
 0x23c   : > { %v798_v13 = vpop.xlane.xlu2 %797 }
 0x23d   : > { %v799_v15 = vrot.slane %v798_v13, 4 }
 0x23f   : > { %v800_v20 = vadd.f32 %v799_v15, %v798_v13 }
 0x241   : > { %v801_v25 = vrot.slane %v800_v20, 2 }
 0x243   : > { %v802_v26 = vadd.f32 %v801_v25, %v800_v20 }
 0x244   : > { %v880_v39 = vpop.permute.xlu2 %879 }
 0x245   : > { %v803_v28 = vrot.slane %v802_v26, 1  ;;  %v882_v40 = vperm.slane %v880_v39, 0 }
 0x247   : > { %v804_v30 = vadd.f32 %v803_v28, %v802_v26  ;;  %v883_v48 = vmul.f32 %v882_v40, %v876_v41 }
 0x249   : > { %1363 = vpush %v804_v30 }
 0x258   : > { %v842_v31 = vpop.trf.xlu0 }
 0x259   : > { %871 = vmatmul.bf16.vlgmr.msrb.gmra.mxu3 %v842_v31  ;;  %858 = vmatmul.bf16.vlgmr.msrb.gmra.mxu2 %v842_v31 }
 0x27a   : > { %s1364_s30 = spop %1363 }
 0x27b   : > { %v806_v32 = vstv %s1364_s30  ;;  %s1106_s30 = scalar_lea.sflag [#allocation6], %s265_s16 }
 0x27c   : > { %v807_v34 = vadd.f32 %v806_v32, %v764_v29 }
 0x27e   : > { %809 = vst.msk [vmem:[#allocation4] sm:$0x1] %vm287_vm1, %v807_v34 }
 0x283   : > { %1425 = vset.pattern.permute.xlu0 %v1534_v59 }
 0x285   : > { %v901_v12 = vld [vmem:[#allocation4] sm:$0x1] }
 0x286   : > { %904 = vperm.xlu1 %1423, %v901_v12  }
 0x2dc   : > { %v872_v43 = vpop.f32.mrf.mxu3  ;;  %v859_v45 = vpop.f32.mrf.mxu2 }
 0x2dd   : > { %v886_v47 = vrot.slane %v872_v43, 7 }
 0x2df   : > { %v888_v50 = vsel %vm887_vm4, %v859_v45, %v886_v47 }
 0x2e0   : > { %v890_v51 = vadd.f32 %v888_v50, %v883_v48 }
 0x2e2   : > { %895 = vst.msk [vmem:[#allocation2] sm:$0x3] %vm1804_vm3, %v890_v51 }
 0x2e4   : > { %v861_v53 = vpop.f32.mrf.mxu2  ;;  %v874_v22 = vpop.f32.mrf.mxu3 }
 0x2e9   : > { %v900_v60 = vld [vmem:[#allocation2] sm:$0x3] }
 0x2f8   : > { %v905_v24 = vpop.permute.xlu1 %904 }
 0x2f9   : > { %v907_v0 = vperm.slane %v905_v24, 0 }
 0x2fb   : > { %1446 = vrcp.f32 %v907_v0  ;;  %v919_v42 = vand.u32 2147483648, %v907_v0  ;;  %v917_v44 = vand.u32 2147483647, %v907_v0  ;;  %vm913_vm6 = vweird.f32 %v907_v0 }
 0x2fd   : > { %v920_v58 = vor.u32 1.1754944e-38, %v919_v42  ;;  %vm918_vm8 = vcmp.eq.f32.partialorder %v917_v44, 8.507059e+37 }
 0x301   : > { %v1447_v49 = vpop.eup %1446 }
 0x302   : > { %v909_v2 = vmul.f32 %v1447_v49, %v907_v0  ;;  %vm914_vm5 = vweird.f32 %v1447_v49 }
 0x303   : > { %vm915_vm7 = vmor %vm913_vm6, %vm914_vm5 }
 0x304   : > { %v910_v55 = vsub.f32 1.0, %v909_v2 }
 0x306   : > { %v911_v56 = vmul.f32 %v1447_v49, %v910_v55 }
 0x308   : > { %v912_v57 = vadd.f32 %v1447_v49, %v911_v56 }
 0x30a   : > { %v916_v59 = vsel %vm915_vm7, %v1447_v49, %v912_v57 }
 0x30b   : > { %v921_v61 = vsel %vm918_vm8, %v920_v58, %v916_v59 }
 0x30c   : > { %v922_v62 = vmul.f32 %v921_v61, %v900_v60 }
 0x30e   : > { %v924_v63 = vperm.slane %v922_v62, 0  ;;  %v925_v1 = vperm.slane %v922_v62, 1 }
 0x310   : > { %v928_v3 = vpack.c.bf16 %v924_v63, %v924_v63  ;;  %v929_v4 = vpack.c.bf16 %v925_v1, %v925_v1 }
 0x312   : > { %1067 = vmatmul.bf16.vlgmr.msra.gmra.mxu2 %v928_v3  ;;  %1080 = vmatmul.bf16.vlgmr.msra.gmra.mxu3 %v929_v4 }
 0x395   : > { %v1068_v7 = vpop.f32.mrf.mxu2  ;;  %v1081_v9 = vpop.f32.mrf.mxu3 }
 0x396   : > { %v1069_v14 = vadd.f32 %v1068_v7, %v962_v6 }
 0x398   : > { %v1082_v17 = vadd.f32 %v1081_v9, %v1069_v14 }
 0x39a   : > { %v1322_v18 = vmul.f32 -1.442695, %v1082_v17 }
 0x39c   : > { %1448 = vpow2.f32 %v1322_v18 }
 0x39d   : > { %v1070_v13 = vpop.f32.mrf.mxu2  ;;  %v1083_v15 = vpop.f32.mrf.mxu3 }
 0x3a2   : > { %v1449_v20 = vpop.eup %1448 }
 0x3a3   : > { %v1088_v25 = vadd.f32 1.0, %v1449_v20 }
 0x3a5   : > { %1450 = vrcp.f32 %v1088_v25  ;;  %v1100_v31 = vand.u32 2147483648, %v1088_v25  ;;  %v1098_v29 = vand.u32 2147483647, %v1088_v25  ;;  %vm1094_vm10 = vweird.f32 %v1088_v25 }
 0x3a7   : > { %v1101_v34 = vor.u32 1.1754944e-38, %v1100_v31  ;;  %vm1099_vm12 = vcmp.eq.f32.partialorder %v1098_v29, 8.507059e+37 }
 0x3ab   : > { %v1451_v26 = vpop.eup %1450 }
 0x3ac   : > { %v1090_v28 = vmul.f32 %v1451_v26, %v1088_v25  ;;  %vm1095_vm9 = vweird.f32 %v1451_v26 }
 0x3ad   : > { %vm1096_vm11 = vmor %vm1094_vm10, %vm1095_vm9 }
 0x3ae   : > { %v1091_v30 = vsub.f32 1.0, %v1090_v28 }
 0x3b0   : > { %v1092_v27 = vmul.f32 %v1451_v26, %v1091_v30 }
 0x3b2   : > { %v1093_v32 = vadd.f32 %v1451_v26, %v1092_v27 }
 0x3b4   : > { %v1097_v12 = vsel %vm1096_vm11, %v1451_v26, %v1093_v32 }
 0x3b5   : > { %v1102_v35 = vsel %vm1099_vm12, %v1101_v34, %v1097_v12 }
 0x3b6   : > { %1104 = vst [vmem:[%s266_s20] sm:$0x1] %v1102_v35 }
 0x3b7   : > { %1479 = shalt.err (!%p1476_p5)
}
 0x3b8   : > { %1365 = dma.vmem_to_hbm [thread:$0]  (%p1610_p4), %s1117_s27, 16, %s1119_s28, %s1106_s30  }
 0x3b9 PF: > { %p1371_p6 = scmp.ge.s32.totalorder %s1530_s26, 2  ;;  %s1130_s16 = sand.u32 1, %s1510_s21  }
 0x3ba   : > { %s1131_s17 = scalar_lea.sflag [#allocation6], %s1130_s16 }
 0x3bb   : > { %p1368_p7 = pnand %p1371_p6, %p1617_p8 }
 0x3bd   : > { %p1369_p9 = pneg %p1368_p7 }
 0x3bf   : > { %1505 = dma.done.wait (%p1369_p9), %s1131_s17, 16  }
 0x3c0   : > { %1507 = vsyncadd (%p1369_p9), %s1131_s17, 4294967280  ;;  %s19_s26 = sadd.s32 1, %s1530_s26   ;;  %s1913_s21 = smov %s1514_s22 }
 0x3c1   : > { %p16_p10 = scmp.ge.s32.totalorder %s19_s26, 4   ;;  %s1914_s22 = smov %s1518_s23 }
 0x3c2   : > { %s1915_s23 = smov %s1623_s10  ;;  %s1916_s24 = smov %s1526_s25 }
 0x3c3   : > { %s1917_s25 = smov %s1919_s29  ;;  %18 = sbr.rel (!%p16_p10) target bundleno = 4 (0x4), region = 87 }
 0x3c8   :  { %1136 = vsyncpa [#allocation6], 1 }
 0x3c9   :  { %1138 = vsyncpa [#allocation6 + $0x1], 1 }

</bundles_post_ra>
